<compile_context>
chip_gen: v6e
topology: v6e:2x2x1
jax: 0.10.0
libtpu: 0.0.40
codegen_flags: <defaults>
</compile_context>

<pallas_src>
import functools

import jax
import jax.numpy as jnp
from jax.experimental import pallas as pl
from jax.experimental.pallas import tpu as pltpu


def _embed2token_kernel(tok_ref, emb_ref, wq_ref, wkv_ref, wp_ref, bp_ref,
                        out_ref, *, scale, bt, n, c):
    # tok_ref / emb_ref / out_ref blocks: (bt*n, c); weights full; bias (1, c).
    tok = tok_ref[...]                                   # (bt*n, c)
    emb = emb_ref[...]                                   # (bt*n, c)

    # Projections with batch folded into the M-dim (single wide MXU matmuls).
    q2 = jnp.dot(tok, wq_ref[...], preferred_element_type=jnp.float32)    # (bt*n, c)
    kv = jnp.dot(emb, wkv_ref[...], preferred_element_type=jnp.float32)   # (bt*n, 2c)
    k2 = kv[:, :c]                                       # static lane slices: free
    v2 = kv[:, c:]

    # Per-batch attention. N is a multiple of 8, so these leading-dim
    # splits/collapses are layout-preserving (no relayout).
    q = q2.reshape(bt, n, c)
    k = k2.reshape(bt, n, c)
    v = v2.reshape(bt, n, c)

    # Scores: contract channel dim of q against channel dim of k (no k.T).
    s = jnp.einsum("bqc,bkc->bqk", q, k,
                   preferred_element_type=jnp.float32) * scale            # (bt, n, n)
    s = s - jnp.max(s, axis=-1, keepdims=True)
    p = jnp.exp(s)
    denom = jnp.sum(p, axis=-1, keepdims=True)                            # (bt, n, 1)

    # Un-normalized weighted values, then scale rows by approx reciprocal
    # (EUP slot; touches only (n, c) instead of the (n, n) tile).
    x = jnp.einsum("bqk,bkc->bqc", p, v,
                   preferred_element_type=jnp.float32)                    # (bt, n, c)
    x = x * pl.reciprocal(denom, approx=True)

    # Output projection with bias, batch folded back into M.
    o = jnp.dot(x.reshape(bt * n, c), wp_ref[...],
                preferred_element_type=jnp.float32) + bp_ref[...]
    out_ref[...] = o.astype(out_ref.dtype)


def _choose_batch_tile(B, N, target_rows=256, max_rows=1024):
    """Batch-elements per grid step: aim for >=256 M-rows per step, prefer
    keeping >=2 grid steps (v7x megacore), else take the largest fitting tile
    to amortize per-step pipeline overhead."""
    divisors = [bt for bt in range(1, B + 1) if B % bt == 0]
    fitting = [bt for bt in divisors if bt * N <= max_rows] or [1]
    reach = [bt for bt in fitting if bt * N >= target_rows]
    multi = [bt for bt in reach if B // bt >= 2]
    if multi:
        return min(multi)
    if reach:
        return min(reach)
    return max(fitting)


def embed2token(token, embed, wq, wk, wv, wp, bp):
    """token, embed: (B, N, C); weights (C, C)/(C,) in (in, out) layout."""
    B, N, C = token.shape
    assert embed.shape == (B, N, C)      # module's implicit Nt == Ne requirement
    scale = float(C) ** -0.5
    dtype = token.dtype
    itemsize = jnp.dtype(dtype).itemsize

    # --- lane-dense channel padding (zero padding keeps the math exact) -----
    LANE = 128
    Cp = ((C + LANE - 1) // LANE) * LANE
    pad_c = Cp - C

    def pad2(w):
        return jnp.pad(w, ((0, pad_c), (0, pad_c))) if pad_c else w

    wq_p, wk_p, wv_p, wp_p = pad2(wq), pad2(wk), pad2(wv), pad2(wp)
    wkv_p = jnp.concatenate([wk_p, wv_p], axis=1)                 # fused (Cp, 2Cp)
    bp_p = (jnp.pad(bp, (0, pad_c)) if pad_c else bp).reshape(1, Cp)

    if pad_c:
        token = jnp.pad(token, ((0, 0), (0, 0), (0, pad_c)))
        embed = jnp.pad(embed, ((0, 0), (0, 0), (0, pad_c)))

    # --- fold batch into the matmul M-dim -----------------------------------
    Bt = _choose_batch_tile(B, N)
    TM = Bt * N
    tok2 = token.reshape(B * N, Cp)
    emb2 = embed.reshape(B * N, Cp)

    # --- explicit VMEM budget (valid on v5e/v6e/v7x) -------------------------
    weight_bytes = (2 * Cp * Cp + Cp * 2 * Cp + Cp) * itemsize
    act_bytes = 3 * TM * Cp * itemsize
    inter_bytes = (8 * TM * Cp + 2 * Bt * N * N) * 4
    est = 2 * (weight_bytes + act_bytes) + inter_bytes            # double-buffered I/O
    vmem_limit = int(min(max(2 * est, 32 << 20), 48 << 20))

    kernel = functools.partial(_embed2token_kernel,
                               scale=scale, bt=Bt, n=N, c=Cp)

    out2 = pl.pallas_call(
        kernel,
        out_shape=jax.ShapeDtypeStruct((B * N, Cp), dtype),
        grid_spec=pltpu.PrefetchScalarGridSpec(
            num_scalar_prefetch=0,
            grid=(B // Bt,),
            in_specs=[
                pl.BlockSpec((TM, Cp), lambda i: (i, 0)),      # token rows
                pl.BlockSpec((TM, Cp), lambda i: (i, 0)),      # embed rows
                pl.BlockSpec((Cp, Cp), lambda i: (0, 0)),      # Wq
                pl.BlockSpec((Cp, 2 * Cp), lambda i: (0, 0)),  # Wkv (fused)
                pl.BlockSpec((Cp, Cp), lambda i: (0, 0)),      # Wproj
                pl.BlockSpec((1, Cp), lambda i: (0, 0)),       # bproj
            ],
            out_specs=pl.BlockSpec((TM, Cp), lambda i: (i, 0)),
        ),
        compiler_params=pltpu.CompilerParams(
            dimension_semantics=("parallel",),
            vmem_limit_bytes=vmem_limit),
    )(tok2, emb2, wq_p, wkv_p, wp_p, bp_p)

    out = out2.reshape(B, N, Cp)
    return out[:, :, :C] if pad_c else out


def embed2token_ref(token, embed, wq, wk, wv, wp, bp):
    """Pure-JAX reference matching the PyTorch forward."""
    C = token.shape[-1]
    scale = float(C) ** -0.5
    q = token @ wq
    k = embed @ wk
    v = embed @ wv
    attn = jnp.einsum("bqc,bkc->bqk", q, k) * scale
    attn = jax.nn.softmax(attn, axis=-1)
    x = jnp.einsum("bqk,bkc->bqc", attn, v)
    return x @ wp + bp


if __name__ == "__main__":
    B, N, C = 2, 8, 32   # batch, seq (Nt == Ne), dim

    key = jax.random.PRNGKey(0)
    k_tok, k_emb, k_q, k_kv, k_p, k_pb = jax.random.split(key, 6)

    token = jax.random.normal(k_tok, (B, N, C), dtype=jnp.float32)
    embed = jax.random.normal(k_emb, (B, N, C), dtype=jnp.float32)

    # Deterministic parameter init (PyTorch-Linear-style uniform(+/- 1/sqrt(in)))
    bound = 1.0 / (C ** 0.5)
    wq = jax.random.uniform(k_q, (C, C), jnp.float32, -bound, bound)
    # self.kv is a single (C -> 2C) linear; split its output columns into Wk, Wv
    wkv = jax.random.uniform(k_kv, (C, 2 * C), jnp.float32, -bound, bound)
    wk, wv = wkv[:, :C], wkv[:, C:]
    wp = jax.random.uniform(k_p, (C, C), jnp.float32, -bound, bound)
    bp = jax.random.uniform(k_pb, (C,), jnp.float32, -bound, bound)

    out = embed2token(token, embed, wq, wk, wv, wp, bp)
    out = jax.block_until_ready(out)

    ref = embed2token_ref(token, embed, wq, wk, wv, wp, bp)
    assert out.shape == (B, N, C)
    # Tolerance loosened slightly vs the pure-f32 reference because the softmax
    # denominator uses the EUP approximate reciprocal (pl.reciprocal(approx=True)).
    assert jnp.allclose(out, ref, atol=5e-3, rtol=5e-3), "mismatch vs reference"

    print("KERNEL_OK")
</pallas_src>

<mosaic_0001>
module attributes {stable_mosaic.version = 11 : i64} {
  func.func @_embed2token_kernel(%arg0: i32, %arg1: memref<16x128xf32, #tpu.memory_space<vmem>>, %arg2: memref<16x128xf32, #tpu.memory_space<vmem>>, %arg3: memref<128x128xf32, #tpu.memory_space<vmem>>, %arg4: memref<128x256xf32, #tpu.memory_space<vmem>>, %arg5: memref<128x128xf32, #tpu.memory_space<vmem>>, %arg6: memref<1x128xf32, #tpu.memory_space<vmem>>, %arg7: memref<16x128xf32, #tpu.memory_space<vmem>>) attributes {dimension_semantics = [#tpu.dimension_semantics<parallel>], iteration_bounds = array<i64: 1>, scalar_prefetch = 0 : i64, scratch_operands = 0 : i64, tpu.core_type = #tpu.core_type<tc>, window_params = [{transform_indices = @transform_0, window_bounds = array<i64: 16, 128>}, {transform_indices = @transform_1, window_bounds = array<i64: 16, 128>}, {pipeline_mode = #tpu.pipeline_mode<synchronous>, transform_indices = @transform_2, window_bounds = array<i64: 128, 128>}, {pipeline_mode = #tpu.pipeline_mode<synchronous>, transform_indices = @transform_3, window_bounds = array<i64: 128, 256>}, {pipeline_mode = #tpu.pipeline_mode<synchronous>, transform_indices = @transform_4, window_bounds = array<i64: 128, 128>}, {pipeline_mode = #tpu.pipeline_mode<synchronous>, transform_indices = @transform_5, window_bounds = array<i64: 1, 128>}, {transform_indices = @transform_6, window_bounds = array<i64: 16, 128>}]} {
    %c0 = arith.constant 0 : index
    %c0_0 = arith.constant 0 : index
    %0 = vector.load %arg1[%c0, %c0_0] : memref<16x128xf32, #tpu.memory_space<vmem>>, vector<16x128xf32>
    %c0_1 = arith.constant 0 : index
    %c0_2 = arith.constant 0 : index
    %1 = vector.load %arg2[%c0_1, %c0_2] : memref<16x128xf32, #tpu.memory_space<vmem>>, vector<16x128xf32>
    %c0_3 = arith.constant 0 : index
    %c0_4 = arith.constant 0 : index
    %2 = vector.load %arg3[%c0_3, %c0_4] : memref<128x128xf32, #tpu.memory_space<vmem>>, vector<128x128xf32>
    %cst = arith.constant dense<0.000000e+00> : vector<16x128xf32>
    %3 = tpu.matmul %0, %2, %cst {dimension_numbers = #tpu.dot_dimension_numbers<[1], [0], [0], [1], [0, 0, 1, 1], [], []>} : vector<16x128xf32>, vector<128x128xf32>, vector<16x128xf32> -> vector<16x128xf32>
    %c0_5 = arith.constant 0 : index
    %c0_6 = arith.constant 0 : index
    %4 = vector.load %arg4[%c0_5, %c0_6] : memref<128x256xf32, #tpu.memory_space<vmem>>, vector<128x256xf32>
    %cst_7 = arith.constant dense<0.000000e+00> : vector<16x256xf32>
    %5 = tpu.matmul %1, %4, %cst_7 {dimension_numbers = #tpu.dot_dimension_numbers<[1], [0], [0], [1], [0, 0, 1, 1], [], []>} : vector<16x128xf32>, vector<128x256xf32>, vector<16x256xf32> -> vector<16x256xf32>
    %6 = vector.extract_strided_slice %5 {offsets = [0, 0], sizes = [16, 128], strides = [1, 1]} : vector<16x256xf32> to vector<16x128xf32>
    %7 = vector.extract_strided_slice %5 {offsets = [0, 128], sizes = [16, 128], strides = [1, 1]} : vector<16x256xf32> to vector<16x128xf32>
    %8 = vector.shape_cast %3 : vector<16x128xf32> to vector<2x8x128xf32>
    %9 = vector.shape_cast %6 : vector<16x128xf32> to vector<2x8x128xf32>
    %10 = vector.shape_cast %7 : vector<16x128xf32> to vector<2x8x128xf32>
    "tpu.trace_start"() <{level = 10 : i32, message = "bqc,bkc->bqk"}> : () -> ()
    %cst_8 = arith.constant dense<0.000000e+00> : vector<2x8x8xf32>
    %11 = tpu.matmul %8, %9, %cst_8 {dimension_numbers = #tpu.dot_dimension_numbers<[2], [2], [1], [1], [0, 0, 0, 1, 1, 1], [0], [0]>} : vector<2x8x128xf32>, vector<2x8x128xf32>, vector<2x8x8xf32> -> vector<2x8x8xf32>
    "tpu.trace_stop"() : () -> ()
    %cst_9 = arith.constant 0.176776692 : f32
    %12 = vector.broadcast %cst_9 : f32 to vector<2x8x8xf32>
    %13 = arith.mulf %11, %12 : vector<2x8x8xf32>
    %cst_10 = arith.constant dense<0xFF800000> : vector<2x8xf32>
    %14 = vector.multi_reduction <maximumf>, %13, %cst_10 [2] : vector<2x8x8xf32> to vector<2x8xf32>
    %15 = vector.shape_cast %14 : vector<2x8xf32> to vector<2x8x1xf32>
    %16 = vector.broadcast %15 : vector<2x8x1xf32> to vector<2x8x8xf32>
    %17 = arith.subf %13, %16 : vector<2x8x8xf32>
    %18 = math.exp %17 : vector<2x8x8xf32>
    %cst_11 = arith.constant dense<0.000000e+00> : vector<2x8xf32>
    %19 = vector.multi_reduction <add>, %18, %cst_11 [2] : vector<2x8x8xf32> to vector<2x8xf32>
    %20 = vector.shape_cast %19 : vector<2x8xf32> to vector<2x8x1xf32>
    "tpu.trace_start"() <{level = 10 : i32, message = "bqk,bkc->bqc"}> : () -> ()
    %cst_12 = arith.constant dense<0.000000e+00> : vector<2x8x128xf32>
    %21 = tpu.matmul %18, %10, %cst_12 {dimension_numbers = #tpu.dot_dimension_numbers<[2], [1], [1], [2], [0, 0, 0, 1, 1, 2], [0], [0]>} : vector<2x8x8xf32>, vector<2x8x128xf32>, vector<2x8x128xf32> -> vector<2x8x128xf32>
    "tpu.trace_stop"() : () -> ()
    %22 = tpu.reciprocal %20 {approx = true} : vector<2x8x1xf32> -> vector<2x8x1xf32>
    %23 = vector.broadcast %22 : vector<2x8x1xf32> to vector<2x8x128xf32>
    %24 = arith.mulf %21, %23 : vector<2x8x128xf32>
    %25 = vector.shape_cast %24 : vector<2x8x128xf32> to vector<16x128xf32>
    %c0_13 = arith.constant 0 : index
    %c0_14 = arith.constant 0 : index
    %26 = vector.load %arg5[%c0_13, %c0_14] : memref<128x128xf32, #tpu.memory_space<vmem>>, vector<128x128xf32>
    %cst_15 = arith.constant dense<0.000000e+00> : vector<16x128xf32>
    %27 = tpu.matmul %25, %26, %cst_15 {dimension_numbers = #tpu.dot_dimension_numbers<[1], [0], [0], [1], [0, 0, 1, 1], [], []>} : vector<16x128xf32>, vector<128x128xf32>, vector<16x128xf32> -> vector<16x128xf32>
    %c0_16 = arith.constant 0 : index
    %c0_17 = arith.constant 0 : index
    %28 = vector.load %arg6[%c0_16, %c0_17] : memref<1x128xf32, #tpu.memory_space<vmem>>, vector<1x128xf32>
    %29 = vector.broadcast %28 : vector<1x128xf32> to vector<16x128xf32>
    %30 = arith.addf %27, %29 : vector<16x128xf32>
    %c0_18 = arith.constant 0 : index
    %c0_19 = arith.constant 0 : index
    %31 = vector.load %arg7[%c0_18, %c0_19] : memref<16x128xf32, #tpu.memory_space<vmem>>, vector<16x128xf32>
    tpu.vector_store %arg7[%c0_18, %c0_19], %30 {strides = array<i32>} : memref<16x128xf32, #tpu.memory_space<vmem>>, vector<16x128xf32>,
    return
  }
  func.func @transform_0(%arg0: i32) -> (i32, i32) {
    %c0_i32 = arith.constant 0 : i32
    %c0_i32_0 = arith.constant 0 : i32
    return %arg0, %c0_i32 : i32, i32
  }
  func.func @transform_1(%arg0: i32) -> (i32, i32) {
    %c0_i32 = arith.constant 0 : i32
    %c0_i32_0 = arith.constant 0 : i32
    return %arg0, %c0_i32 : i32, i32
  }
  func.func @transform_2(%arg0: i32) -> (i32, i32) {
    %c0_i32 = arith.constant 0 : i32
    %c0_i32_0 = arith.constant 0 : i32
    %c0_i32_1 = arith.constant 0 : i32
    return %c0_i32, %c0_i32_0 : i32, i32
  }
  func.func @transform_3(%arg0: i32) -> (i32, i32) {
    %c0_i32 = arith.constant 0 : i32
    %c0_i32_0 = arith.constant 0 : i32
    %c0_i32_1 = arith.constant 0 : i32
    return %c0_i32, %c0_i32_0 : i32, i32
  }
  func.func @transform_4(%arg0: i32) -> (i32, i32) {
    %c0_i32 = arith.constant 0 : i32
    %c0_i32_0 = arith.constant 0 : i32
    %c0_i32_1 = arith.constant 0 : i32
    return %c0_i32, %c0_i32_0 : i32, i32
  }
  func.func @transform_5(%arg0: i32) -> (i32, i32) {
    %c0_i32 = arith.constant 0 : i32
    %c0_i32_0 = arith.constant 0 : i32
    %c0_i32_1 = arith.constant 0 : i32
    return %c0_i32, %c0_i32_0 : i32, i32
  }
  func.func @transform_6(%arg0: i32) -> (i32, i32) {
    %c0_i32 = arith.constant 0 : i32
    %c0_i32_0 = arith.constant 0 : i32
    return %arg0, %c0_i32 : i32, i32
  }
}

</mosaic_0001>

<bundles_post_ra>
// kernel: tpu_custom_call.1
= control target key start
LH: loop header
LB: loop body
LE: loop exit
PB: predicated region body
PF: predicated region fallthrough
CT: control target
= control target key end

     0   :  { %11 = vsyncpa [#allocation3], 0  ;;  %s1114_s0 = inlined_call_operand.hbm [shape: f32[16,128], index: 0, kind: input, shape index: {}]   ;;  %s1115_s1 = inlined_call_operand.hbm [shape: f32[16,128], index: 1, kind: input, shape index: {}]   ;;  %s1116_s2 = inlined_call_operand.hbm [shape: f32[128,128], index: 2, kind: input, shape index: {}]   ;;  %s1117_s3 = inlined_call_operand.hbm [shape: f32[128,256], index: 3, kind: input, shape index: {}]   ;;  %s1118_s4 = inlined_call_operand.hbm [shape: f32[128,128], index: 4, kind: input, shape index: {}]   ;;  %s1119_s5 = inlined_call_operand.vmem [shape: f32[1,128], index: 5, kind: input, shape index: {}]   ;;  %s1120_s6 = inlined_call_operand.hbm [shape: f32[16,128], index: 6, kind: output, shape index: {}]  }
   0x1   :  { %12 = vsyncpa [#allocation6], 0 }
   0x2   :  { %13 = vsyncpa [#allocation9], 0 }
   0x3   :  { %14 = vsyncpa [#allocation4], 0  ;;  %s1011_s21 = smov [#allocation5]   ;;  %s1012_s23 = smov [#allocation8]  }
   0x4   :  { %s32_s22 = sshll.u32 %s1011_s21, 4  ;;  %s56_s24 = sshll.u32 %s1012_s23, 4  ;;  %s33_s22 = int_to_ptr.vmem [resolvable:$true] %s32_s22  ;;  %s57_s24 = int_to_ptr.vmem [resolvable:$true] %s56_s24 }
   0x5   :  { %s891_s25 = scalar_lea.vmem %s33_s22, 256  ;;  %p896_p1 = scmp.lt.s32.totalorder %s33_s22, %s33_s22 }
   0x6   :  { %p892_p0 = scmp.ne.s32.totalorder %s33_s22, %s891_s25  ;;  %p897_p2 = scmp.lt.s32.totalorder %s891_s25, %s891_s25 }
   0x8   :  { %p898_p3 = por %p897_p2, %p896_p1 }
   0xa   :  { %p899_p4 = pnand %p898_p3, %p892_p0 }
   0xc   :  { %902 = shalt.err (!%p899_p4)
}
   0xd   :  { %s1013_s26 = smov 128   ;;  %s1014_s27 = smov 8  }
   0xe   :  { %38 = dma.hbm_to_vmem [thread:$0]  %s1115_s1, 256, %s33_s22, [#allocation6], %s1013_s26, %s1013_s26, %s1014_s27  }
   0xf   :  { %s911_s30 = scalar_lea.vmem %s57_s24, 4096  ;;  %p916_p6 = scmp.lt.s32.totalorder %s57_s24, %s57_s24 }
  0x10   :  { %p912_p5 = scmp.ne.s32.totalorder %s57_s24, %s911_s30  ;;  %p917_p7 = scmp.lt.s32.totalorder %s911_s30, %s911_s30 }
  0x12   :  { %p918_p8 = por %p917_p7, %p916_p6 }
  0x14   :  { %p919_p9 = pnand %p918_p8, %p912_p5 }
  0x16   :  { %922 = shalt.err (!%p919_p9)
}
  0x17   :  { %s1015_s7 = smov 256   ;;  %s1016_s8 = smov 16  }
  0x18   :  { %62 = dma.hbm_to_vmem [thread:$0]  %s1117_s3, 4096, %s57_s24, [#allocation9], %s1015_s7, %s1015_s7, %s1016_s8  }
  0x19   :  { %s1017_s11 = smov [#allocation2]   ;;  %s1018_s13 = smov [#allocation7]  }
  0x1a   :  { %s20_s12 = sshll.u32 %s1017_s11, 4  ;;  %s44_s14 = sshll.u32 %s1018_s13, 4  ;;  %s21_s12 = int_to_ptr.vmem [resolvable:$true] %s20_s12  ;;  %s45_s14 = int_to_ptr.vmem [resolvable:$true] %s44_s14 }
  0x1b   :  { %s931_s1 = scalar_lea.vmem %s21_s12, 256  ;;  %p936_p11 = scmp.lt.s32.totalorder %s21_s12, %s21_s12 }
  0x1c   :  { %p932_p10 = scmp.ne.s32.totalorder %s21_s12, %s931_s1  ;;  %p937_p12 = scmp.lt.s32.totalorder %s931_s1, %s931_s1 }
  0x1e   :  { %p938_p13 = por %p937_p12, %p936_p11 }
  0x20   :  { %p939_p0 = pnand %p938_p13, %p932_p10 }
  0x22   :  { %942 = shalt.err (!%p939_p0)
}
  0x23   :  { %26 = dma.hbm_to_vmem [thread:$0]  %s1114_s0, 256, %s21_s12, [#allocation3], %s1013_s26, %s1013_s26, %s1014_s27  }
  0x24   :  { %s951_s3 = scalar_lea.vmem %s45_s14, 2048  ;;  %p956_p2 = scmp.lt.s32.totalorder %s45_s14, %s45_s14 }
  0x25   :  { %p952_p1 = scmp.ne.s32.totalorder %s45_s14, %s951_s3  ;;  %p957_p3 = scmp.lt.s32.totalorder %s951_s3, %s951_s3 }
  0x27   :  { %p958_p4 = por %p957_p3, %p956_p2 }
  0x29   :  { %p959_p5 = pnand %p958_p4, %p952_p1 }
  0x2b   :  { %962 = shalt.err (!%p959_p5)
}
  0x2c   :  { %50 = dma.hbm_to_vmem [thread:$0]  %s1116_s2, 2048, %s45_s14, [#allocation6], %s1013_s26, %s1013_s26, %s1014_s27  }
  0x2d   :  { %s1019_s19 = smov [#allocation10]  }
  0x2e   :  { %s68_s20 = sshll.u32 %s1019_s19, 4  ;;  %s69_s20 = int_to_ptr.vmem [resolvable:$true] %s68_s20 }
  0x2f   :  { %s971_s21 = scalar_lea.vmem %s69_s20, 2048  ;;  %p976_p7 = scmp.lt.s32.totalorder %s69_s20, %s69_s20 }
  0x30   :  { %p972_p6 = scmp.ne.s32.totalorder %s69_s20, %s971_s21  ;;  %p977_p8 = scmp.lt.s32.totalorder %s971_s21, %s971_s21 }
  0x32   :  { %p978_p9 = por %p977_p8, %p976_p7 }
  0x34   :  { %p979_p10 = pnand %p978_p9, %p972_p6 }
  0x36   :  { %982 = shalt.err (!%p979_p10)
}
  0x37   :  { %74 = dma.hbm_to_vmem [thread:$0]  %s1118_s4, 2048, %s69_s20, [#allocation9], %s1013_s26, %s1013_s26, %s1014_s27  }
  0x38   :  { %1003 = dma.done.wait [#allocation3], 256  }
  0x39   :  { %1004 = vsyncadd [#allocation3], 4294967040 }
  0x3a   :  { %1005 = dma.done.wait [#allocation6], 2304  }
  0x3b   :  { %1006 = vsyncadd [#allocation6], 4294964992 }
  0x3c   :  { %1007 = dma.done.wait [#allocation9], 6144  }
  0x3d   :  { %1008 = vsyncadd [#allocation9], 4294961152  ;;  %v1020_v0 = vmov 0.0   ;;  %v111_v1 = vld [vmem:[#allocation7 + $0x78] sm:$0xff]  ;;  %v217_v3 = vld [vmem:[#allocation8 + $0xf0] sm:$0xff]  ;;  %vm1021_vm0 = vmmov 0  }
  0x3e   :  { %283 = vmatprep.mubr.f32.mxu1 %v1020_v0  ;;  %v218_v2 = vld [vmem:[#allocation8 + $0xf8] sm:$0xff]  ;;  %773 = vmatprep.subr.mxu0 %v111_v1  ;;  %v110_v4 = vld [vmem:[#allocation7 + $0x70] sm:$0xff]  ;;  %v216_v5 = vld [vmem:[#allocation8 + $0xe8] sm:$0xff]  ;;  %vm438_vm1 = vcmask 64512   ;;  %s1022_s23 = smov [#allocation11]  }
  0x3f   :  { %219 = vmatprep.subr.mxu1 %v218_v2  ;;  %v215_v6 = vld [vmem:[#allocation8 + $0xe0] sm:$0xff]  ;;  %774 = vmatpush3.msra.mxu0 %v111_v1  ;;  %v109_v7 = vld [vmem:[#allocation7 + $0x68] sm:$0xff]  ;;  %v214_v8 = vld [vmem:[#allocation8 + $0xd8] sm:$0xff]  ;;  %s712_s24 = sshll.u32 %s1022_s23, 4  ;;  %s713_s24 = int_to_ptr.vmem [resolvable:$true] %s712_s24 }
  0x40   :  { %220 = vmatpush1.msra.mxu1 %v217_v3  ;;  %775 = vmatprep.subr.mxu0 %v110_v4  ;;  %v213_v9 = vld [vmem:[#allocation8 + $0xd0] sm:$0xff]  ;;  %v108_v10 = vld [vmem:[#allocation7 + $0x60] sm:$0xff]  ;;  %v212_v11 = vld [vmem:[#allocation8 + $0xc8] sm:$0xff]  ;;  %s983_s25 = scalar_lea.vmem %s713_s24, 256  ;;  %p988_p12 = scmp.lt.s32.totalorder %s713_s24, %s713_s24 }
  0x41   :  { %221 = vmatprep.subr.mxu1 %v216_v5  ;;  %776 = vmatpush3.msra.mxu0 %v110_v4  ;;  %v211_v12 = vld [vmem:[#allocation8 + $0xc0] sm:$0xff]  ;;  %v107_v13 = vld [vmem:[#allocation7 + $0x58] sm:$0xff]  ;;  %v209_v15 = vld [vmem:[#allocation8 + $0xb0] sm:$0xff]  ;;  %p984_p11 = scmp.ne.s32.totalorder %s713_s24, %s983_s25  ;;  %p989_p13 = scmp.lt.s32.totalorder %s983_s25, %s983_s25 }
  0x42   :  { %222 = vmatpush1.msra.mxu1 %v215_v6  ;;  %777 = vmatprep.subr.mxu0 %v109_v7  ;;  %v210_v14 = vld [vmem:[#allocation8 + $0xb8] sm:$0xff]  ;;  %v106_v16 = vld [vmem:[#allocation7 + $0x50] sm:$0xff]  ;;  %v208_v17 = vld [vmem:[#allocation8 + $0xa8] sm:$0xff] }
  0x43   :  { %223 = vmatprep.subr.mxu1 %v214_v8  ;;  %778 = vmatpush3.msra.mxu0 %v109_v7  ;;  %v207_v18 = vld [vmem:[#allocation8 + $0xa0] sm:$0xff]  ;;  %v105_v19 = vld [vmem:[#allocation7 + $0x48] sm:$0xff]  ;;  %v206_v20 = vld [vmem:[#allocation8 + $0x98] sm:$0xff]  ;;  %p990_p0 = por %p989_p13, %p988_p12 }
  0x44   :  { %224 = vmatpush1.msra.mxu1 %v213_v9  ;;  %779 = vmatprep.subr.mxu0 %v108_v10  ;;  %v205_v21 = vld [vmem:[#allocation8 + $0x90] sm:$0xff]  ;;  %v104_v22 = vld [vmem:[#allocation7 + $0x40] sm:$0xff]  ;;  %v204_v23 = vld [vmem:[#allocation8 + $0x88] sm:$0xff] }
  0x45   :  { %225 = vmatprep.subr.mxu1 %v212_v11  ;;  %780 = vmatpush3.msra.mxu0 %v108_v10  ;;  %v203_v24 = vld [vmem:[#allocation8 + $0x80] sm:$0xff]  ;;  %v103_v25 = vld [vmem:[#allocation7 + $0x38] sm:$0xff]  ;;  %v201_v27 = vld [vmem:[#allocation8 + $0x70] sm:$0xff]  ;;  %p991_p1 = pnand %p990_p0, %p984_p11 }
  0x46   :  { %226 = vmatpush1.msra.mxu1 %v211_v12  ;;  %781 = vmatprep.subr.mxu0 %v107_v13  ;;  %v202_v26 = vld [vmem:[#allocation8 + $0x78] sm:$0xff]  ;;  %v102_v28 = vld [vmem:[#allocation7 + $0x30] sm:$0xff]  ;;  %v200_v29 = vld [vmem:[#allocation8 + $0x68] sm:$0xff] }
  0x47   :  { %227 = vmatprep.subr.mxu1 %v210_v14  ;;  %782 = vmatpush3.msra.mxu0 %v107_v13  ;;  %v199_v30 = vld [vmem:[#allocation8 + $0x60] sm:$0xff]  ;;  %v101_v31 = vld [vmem:[#allocation7 + $0x28] sm:$0xff]  ;;  %v198_v32 = vld [vmem:[#allocation8 + $0x58] sm:$0xff] }
  0x48   :  { %228 = vmatpush1.msra.mxu1 %v209_v15  ;;  %783 = vmatprep.subr.mxu0 %v106_v16  ;;  %v197_v33 = vld [vmem:[#allocation8 + $0x50] sm:$0xff]  ;;  %v100_v34 = vld [vmem:[#allocation7 + $0x20] sm:$0xff]  ;;  %v196_v35 = vld [vmem:[#allocation8 + $0x48] sm:$0xff] }
  0x49   :  { %229 = vmatprep.subr.mxu1 %v208_v17  ;;  %784 = vmatpush3.msra.mxu0 %v106_v16  ;;  %v195_v36 = vld [vmem:[#allocation8 + $0x40] sm:$0xff]  ;;  %v99_v37 = vld [vmem:[#allocation7 + $0x18] sm:$0xff]  ;;  %v193_v39 = vld [vmem:[#allocation8 + $0x30] sm:$0xff] }
  0x4a   :  { %230 = vmatpush1.msra.mxu1 %v207_v18  ;;  %785 = vmatprep.subr.mxu0 %v105_v19  ;;  %v194_v38 = vld [vmem:[#allocation8 + $0x38] sm:$0xff]  ;;  %v98_v40 = vld [vmem:[#allocation7 + $0x10] sm:$0xff]  ;;  %v192_v41 = vld [vmem:[#allocation8 + $0x28] sm:$0xff] }
  0x4b   :  { %231 = vmatprep.subr.mxu1 %v206_v20  ;;  %786 = vmatpush3.msra.mxu0 %v105_v19  ;;  %v191_v42 = vld [vmem:[#allocation8 + $0x20] sm:$0xff]  ;;  %v97_v43 = vld [vmem:[#allocation7 + $0x8] sm:$0xff]  ;;  %v190_v44 = vld [vmem:[#allocation8 + $0x18] sm:$0xff] }
  0x4c   :  { %232 = vmatpush1.msra.mxu1 %v205_v21  ;;  %787 = vmatprep.subr.mxu0 %v104_v22  ;;  %v189_v45 = vld [vmem:[#allocation8 + $0x10] sm:$0xff]  ;;  %v96_v46 = vld [vmem:[#allocation7] sm:$0xff]  ;;  %v188_v47 = vld [vmem:[#allocation8 + $0x8] sm:$0xff] }
  0x4d   :  { %233 = vmatprep.subr.mxu1 %v204_v23  ;;  %788 = vmatpush3.msra.mxu0 %v104_v22  ;;  %v92_v48 = vld [vmem:[#allocation2] sm:$0xff]  ;;  %v93_v50 = vld [vmem:[#allocation2 + $0x8] sm:$0xff]  ;;  %v94_v51 = vld [vmem:[#allocation5] sm:$0xff] }
  0x4e   :  { %234 = vmatpush1.msra.mxu1 %v203_v24  ;;  %789 = vmatprep.subr.mxu0 %v103_v25  ;;  %v187_v49 = vld [vmem:[#allocation8] sm:$0xff]  ;;  %v95_v52 = vld [vmem:[#allocation5 + $0x8] sm:$0xff]  ;;  %v621_v15 = vld [vmem:[#allocation10 + $0x70] sm:$0xff] }
  0x4f   :  { %235 = vmatprep.subr.mxu1 %v202_v26  ;;  %790 = vmatpush3.msra.mxu0 %v103_v25  ;;  %v622_v14 = vld [vmem:[#allocation10 + $0x78] sm:$0xff]  ;;  %v620_v16 = vld [vmem:[#allocation10 + $0x68] sm:$0xff]  ;;  %v619_v17 = vld [vmem:[#allocation10 + $0x60] sm:$0xff] }
  0x50   :  { %236 = vmatpush1.msra.mxu1 %v201_v27  ;;  %791 = vmatprep.subr.mxu0 %v102_v28  ;;  %v618_v18 = vld [vmem:[#allocation10 + $0x58] sm:$0xff]  ;;  %v616_v19 = vld [vmem:[#allocation10 + $0x48] sm:$0xff]  ;;  %v615_v20 = vld [vmem:[#allocation10 + $0x40] sm:$0xff] }
  0x51   :  { %237 = vmatprep.subr.mxu1 %v200_v29  ;;  %792 = vmatpush3.msra.mxu0 %v102_v28  ;;  %v614_v21 = vld [vmem:[#allocation10 + $0x38] sm:$0xff]  ;;  %v613_v22 = vld [vmem:[#allocation10 + $0x30] sm:$0xff]  ;;  %v612_v23 = vld [vmem:[#allocation10 + $0x28] sm:$0xff] }
  0x52   :  { %238 = vmatpush1.msra.mxu1 %v199_v30  ;;  %793 = vmatprep.subr.mxu0 %v101_v31  ;;  %v611_v24 = vld [vmem:[#allocation10 + $0x20] sm:$0xff]  ;;  %v610_v25 = vld [vmem:[#allocation10 + $0x18] sm:$0xff]  ;;  %v609_v26 = vld [vmem:[#allocation10 + $0x10] sm:$0xff] }
  0x53   :  { %239 = vmatprep.subr.mxu1 %v198_v32  ;;  %794 = vmatpush3.msra.mxu0 %v101_v31  ;;  %v608_v27 = vld [vmem:[#allocation10 + $0x8] sm:$0xff]  ;;  %v607_v28 = vld [vmem:[#allocation10] sm:$0xff] }
  0x54   :  { %240 = vmatpush1.msra.mxu1 %v197_v33  ;;  %795 = vmatprep.subr.mxu0 %v100_v34 }
  0x55   :  { %241 = vmatprep.subr.mxu1 %v196_v35  ;;  %796 = vmatpush3.msra.mxu0 %v100_v34 }
  0x56   :  { %242 = vmatpush1.msra.mxu1 %v195_v36  ;;  %797 = vmatprep.subr.mxu0 %v99_v37 }
  0x57   :  { %243 = vmatprep.subr.mxu1 %v194_v38  ;;  %798 = vmatpush3.msra.mxu0 %v99_v37 }
  0x58   :  { %244 = vmatpush1.msra.mxu1 %v193_v39  ;;  %799 = vmatprep.subr.mxu0 %v98_v40  ;;  %v728_v39 = vld [vmem:[%s1119_s5] ss:$0 sm:$0xff] }
  0x59   :  { %245 = vmatprep.subr.mxu1 %v192_v41  ;;  %800 = vmatpush3.msra.mxu0 %v98_v40 }
  0x5a   :  { %246 = vmatpush1.msra.mxu1 %v191_v42  ;;  %801 = vmatprep.subr.mxu0 %v97_v43 }
  0x5b   :  { %247 = vmatprep.subr.mxu1 %v190_v44  ;;  %802 = vmatpush3.msra.mxu0 %v97_v43 }
  0x5c   :  { %248 = vmatpush1.msra.mxu1 %v189_v45  ;;  %803 = vmatprep.subr.mxu0 %v96_v46 }
  0x5d   :  { %249 = vmatprep.subr.mxu1 %v188_v47  ;;  %804 = vmatpush3.msra.mxu0 %v96_v46 }
  0x5e   :  { %805 = vmatprep.mubr.f32.mxu0 %v92_v48  ;;  %250 = vmatpush1.msra.mxu1 %v187_v49 }
  0x5f   :  { %806 = vmatmul.mubr.f32.vlgmr.msra.gmra.mxu0 %v93_v50  ;;  %284 = vmatmul.mubr.f32.vlgmr.msra.gmra.mxu1 %v94_v51 }
  0x60   :  { %808 = vmatprep.subr.mxu0 %v1020_v0  ;;  %289 = vmatprep.mubr.f32.mxu1 %v1020_v0 }
  0x61   :  { %810 = vmatprep.mubr.msk.f32.mxu0 %vm1021_vm0, %v1020_v0  ;;  %828 = vmatprep.subr.mxu1 %v622_v14 }
  0x62   :  { %829 = vmatpush3.msra.mxu1 %v622_v14 }
  0x63   :  { %290 = vmatmul.mubr.f32.gmra.mxu1 %v95_v52  ;;  %830 = vmatprep.subr.mxu1 %v621_v15 }
  0x64   :  { %831 = vmatpush3.msra.mxu1 %v621_v15 }
  0x65   :  { %832 = vmatprep.subr.mxu1 %v620_v16 }
  0x66   :  { %833 = vmatpush3.msra.mxu1 %v620_v16 }
  0x67   :  { %834 = vmatprep.subr.mxu1 %v619_v17 }
  0x68   :  { %835 = vmatpush3.msra.mxu1 %v619_v17 }
  0x69   :  { %836 = vmatprep.subr.mxu1 %v618_v18 }
  0x6a   :  { %837 = vmatpush3.msra.mxu1 %v618_v18 }
 0x11f   :  { %v807_v53 = vpop.f32.mrf.mxu0  ;;  %v285_v54 = vpop.f32.mrf.mxu1 }
 0x120   :  { %809 = vmatpush3.xpose.msra.mxu0 %v285_v54 }
 0x121   :  { %v178_v55 = vpop.f32.mrf.mxu0  ;;  %v287_v56 = vpop.f32.mrf.mxu1  ;;  %813 = vmatprep.subr.mxu0 %v1020_v0 }
 0x123   :  { %v291_v57 = vpop.f32.mrf.mxu1  ;;  %811 = vmatmul.mubr.f32.vlgmr.msra.gmra.mxu0 %v178_v55 }
 0x124   :  { %814 = vmatpush3.xpose.msra.mxu0 %v291_v57  ;;  %815 = vmatprep.mubr.msk.f32.mxu0 %vm1021_vm0, %v1020_v0 }
 0x125   :  { %818 = vmatprep.subr.mxu0 %v1020_v0  ;;  %v293_v10 = vpop.f32.mrf.mxu1 }
 0x127   :  { %816 = vmatmul.mubr.f32.vlgmr.msra.gmra.mxu0 %v807_v53 }
 0x128   :  { %819 = vmatpush3.msra.mxu0 %v287_v56  ;;  %820 = vmatprep.mubr.msk.f32.mxu0 %vm1021_vm0, %v1020_v0 }
 0x129   :  { %823 = vmatprep.subr.mxu0 %v1020_v0 }
 0x1e3   :  { %v362_v58 = vpop.f32.mrf.mxu0 }
 0x1e4   :  { %v436_v59 = vmul.f32 0.17677669, %v362_v58 }
 0x1e5   :  { %v812_v60 = vpop.f32.mrf.mxu0 }
 0x1e6   :  { %v439_v61 = vsel %vm438_vm1, %v436_v59, -inf }
 0x1e7   :  { %440 = vmax.xlane.f32.xlu0 %v439_v61  ;;  %v432_v62 = vpop.f32.mrf.mxu0 }
 0x1e8   :  { %v437_v63 = vmul.f32 0.17677669, %v432_v62 }
 0x1e9   :  { %v817_v1 = vpop.f32.mrf.mxu0 }
 0x1ea   :  { %v442_v2 = vsel %vm438_vm1, %v437_v63, -inf }
 0x1eb   :  { %443 = vmax.xlane.f32.xlu0 %v442_v2 }
 0x270   :  { %v441_v3 = vpop.xlane.xlu0 %440 }
 0x271   :  { %v445_v4 = vsub.f32 %v436_v59, %v441_v3 }
 0x273   :  { %v447_v5 = vmul.f32 1.442695, %v445_v4 }
 0x274   :  { %v444_v6 = vpop.xlane.xlu0 %443 }
 0x275   :  { %875 = vpow2.f32 %v447_v5  ;;  %v446_v7 = vsub.f32 %v437_v63, %v444_v6 }
 0x277   :  { %v449_v8 = vmul.f32 1.442695, %v446_v7 }
 0x279   :  { %877 = vpow2.f32 %v449_v8 }
 0x282   :  { %v876_v9 = vpop.eup %875 }
 0x283   :  { %821 = vmatmul.mubr.msk.f32.vlgmr.msra.gmra.mxu0 %vm438_vm1, %v876_v9  ;;  %v451_v11 = vsel %vm438_vm1, %v876_v9, 0.0 }
 0x284   :  { %824 = vmatpush3.msra.mxu0 %v293_v10  ;;  %452 = vadd.xlane.f32.xlu1 %v451_v11 }
 0x285   :  { %825 = vmatprep.mubr.msk.f32.mxu0 %vm1021_vm0, %v1020_v0  ;;  %v617_v0 = vld [vmem:[#allocation10 + $0x50] sm:$0xff] }
 0x286   :  { %v878_v12 = vpop.eup %877  ;;  %838 = vmatprep.subr.mxu1 %v617_v0 }
 0x287   :  { %826 = vmatmul.mubr.msk.f32.vlgmr.msra.gmra.mxu0 %vm438_vm1, %v878_v12  ;;  %v454_v13 = vsel %vm438_vm1, %v878_v12, 0.0  ;;  %839 = vmatpush3.msra.mxu1 %v617_v0 }
 0x288   :  { %455 = vadd.xlane.f32.xlu1 %v454_v13  ;;  %840 = vmatprep.subr.mxu1 %v616_v19 }
 0x289   :  { %841 = vmatpush3.msra.mxu1 %v616_v19 }
 0x28a   :  { %842 = vmatprep.subr.mxu1 %v615_v20 }
 0x28b   :  { %843 = vmatpush3.msra.mxu1 %v615_v20 }
 0x28c   :  { %844 = vmatprep.subr.mxu1 %v614_v21 }
 0x28d   :  { %845 = vmatpush3.msra.mxu1 %v614_v21 }
 0x28e   :  { %846 = vmatprep.subr.mxu1 %v613_v22 }
 0x28f   :  { %847 = vmatpush3.msra.mxu1 %v613_v22 }
 0x290   :  { %848 = vmatprep.subr.mxu1 %v612_v23 }
 0x291   :  { %849 = vmatpush3.msra.mxu1 %v612_v23 }
 0x292   :  { %850 = vmatprep.subr.mxu1 %v611_v24 }
 0x293   :  { %851 = vmatpush3.msra.mxu1 %v611_v24 }
 0x294   :  { %852 = vmatprep.subr.mxu1 %v610_v25 }
 0x295   :  { %853 = vmatpush3.msra.mxu1 %v610_v25 }
 0x296   :  { %854 = vmatprep.subr.mxu1 %v609_v26 }
 0x297   :  { %855 = vmatpush3.msra.mxu1 %v609_v26 }
 0x298   :  { %856 = vmatprep.subr.mxu1 %v608_v27 }
 0x299   :  { %857 = vmatpush3.msra.mxu1 %v608_v27 }
 0x29a   :  { %858 = vmatprep.subr.mxu1 %v607_v28 }
 0x29b   :  { %859 = vmatpush3.msra.mxu1 %v607_v28 }
 0x30d   :  { %v453_v29 = vpop.xlane.xlu1 %452 }
 0x30e   :  { %879 = vrcp.f32 %v453_v29 }
 0x311   :  { %v456_v30 = vpop.xlane.xlu1 %455 }
 0x312   :  { %881 = vrcp.f32 %v456_v30 }
 0x31b   :  { %v880_v31 = vpop.eup %879 }
 0x31f   :  { %v882_v35 = vpop.eup %881 }
 0x343   :  { %v526_v32 = vpop.f32.mrf.mxu0 }
 0x344   :  { %v605_v33 = vmul.f32 %v880_v31, %v526_v32 }
 0x345   :  { %v822_v34 = vpop.f32.mrf.mxu0 }
 0x346   :  { %860 = vmatprep.mubr.f32.mxu1 %v605_v33 }
 0x347   :  { %v599_v36 = vpop.f32.mrf.mxu0 }
 0x348   :  { %v606_v37 = vmul.f32 %v882_v35, %v599_v36 }
 0x349   :  { %v827_v38 = vpop.f32.mrf.mxu0 }
 0x34a   :  { %861 = vmatmul.mubr.f32.vlgmr.msra.gmra.mxu1 %v606_v37 }
 0x40a   :  { %v862_v40 = vpop.f32.mrf.mxu1 }
 0x40b   :  { %v702_v41 = vadd.f32 %v862_v40, %v728_v39 }
 0x40c   :  { %v696_v42 = vpop.f32.mrf.mxu1 }
 0x40d   :  { %706 = vst [vmem:[#allocation11 + $0x8] sm:$0xff] %v702_v41  ;;  %v697_v43 = vadd.f32 %v728_v39, %v696_v42 }
 0x40f   :  { %705 = vst [vmem:[#allocation11] sm:$0xff] %v697_v43 }
 0x410   :  { %994 = shalt.err (!%p991_p1)
}
 0x411   :  { %718 = dma.vmem_to_hbm [thread:$0]  %s713_s24, 256, %s1120_s6, [#allocation4], %s1013_s26, %s1013_s26, %s1014_s27  }
 0x412   :  { %1009 = dma.done.wait [#allocation4], 256  }
 0x413   :  { %1010 = vsyncadd [#allocation4], 4294967040 }
 0x414   :  { %722 = vsyncpa [#allocation3], 1 }
 0x415   :  { %723 = vsyncpa [#allocation6], 1 }
 0x416   :  { %724 = vsyncpa [#allocation9], 1 }
 0x417   :  { %725 = vsyncpa [#allocation4], 1 }

</bundles_post_ra>
